<compile_context>
chip_gen: v7x
topology: tpu7x:2x2x1
jax: 0.10.0
libtpu: 0.0.40
codegen_flags: <defaults>
</compile_context>

<pallas_src>
import jax
import jax.numpy as jnp
from jax.experimental import pallas as pl
from jax.experimental.pallas import tpu as pltpu


F_SPLIT = 16 * 4          # width of f1..f4 (fixed by the module: 16 * 4)


# ----------------------------------------------------------------------------
# Fused edge-wise kernel: one edge tile -> mlp_msg_Gcc1 -> gate -> mlp_msg_Gcc2
# ----------------------------------------------------------------------------
def toedge_kernel(xs_ref, xd_ref, xe_ref,
                  w1s_ref, w1d_ref, w1e_ref, b1_ref,
                  w2_ref, b2_ref, w3_ref, b3_ref,
                  w4_ref, b4_ref, w5_ref, b5_ref,
                  out_ref):
    cdt = w1s_ref.dtype                                   # matmul operand dtype (bf16 or f32)
    leaky = lambda x: jnp.maximum(x, 0.2 * x)             # LeakyReLU(0.2): single VALU op

    # In-kernel activation cast (VPU work, hidden under the matmuls). Inputs may arrive
    # f32 or already bf16 end-to-end — either way no extra wrapper-side cast pass.
    xs = xs_ref[...].astype(cdt)
    xd = xd_ref[...].astype(cdt)
    xe = xe_ref[...].astype(cdt)

    # --- mlp_msg_Gcc1: Linear(din,128) -> LReLU -> Linear(128,96) -> LReLU -> Linear(96,65)
    # cat([src,dst,edge]) @ W1 is computed as three partial matmuls against the row-split
    # of W1, so the concatenated feature matrix never touches HBM.
    h = (jnp.dot(xs, w1s_ref[...], preferred_element_type=jnp.float32)
         + jnp.dot(xd, w1d_ref[...], preferred_element_type=jnp.float32)
         + jnp.dot(xe, w1e_ref[...], preferred_element_type=jnp.float32)
         + b1_ref[...])
    h = leaky(h).astype(cdt)
    h = jnp.dot(h, w2_ref[...], preferred_element_type=jnp.float32) + b2_ref[...]
    h = leaky(h).astype(cdt)
    y = jnp.dot(h, w3_ref[...], preferred_element_type=jnp.float32) + b3_ref[...]

    # Gcc1 output columns were reordered once at param-prep time: f1..f4 in lanes 0..63
    # (aligned slice), the sigmoid gate k in lane 64.  sigmoid goes to the EUP.
    f = y[:, :F_SPLIT]
    k = jax.nn.sigmoid(y[:, F_SPLIT:F_SPLIT + 1])
    g = (f * k).astype(cdt)                               # == cat([f1*k, f2*k, f3*k, f4*k])

    # --- mlp_msg_Gcc2: Linear(64,32) -> LReLU -> Linear(32, n_out_fe)
    h = jnp.dot(g, w4_ref[...], preferred_element_type=jnp.float32) + b4_ref[...]
    h = leaky(h).astype(cdt)
    out = jnp.dot(h, w5_ref[...], preferred_element_type=jnp.float32) + b5_ref[...]
    out_ref[...] = out.astype(out_ref.dtype)


# ----------------------------------------------------------------------------
# One-time parameter preparation (hoisted out of the per-call forward path)
# ----------------------------------------------------------------------------
def prepare_params(params, n_in_fc, *, compute_dtype=jnp.bfloat16):
    """Reorder Gcc1's output columns, row-split W1 and cast matmul operands once."""
    cdt = compute_dtype
    # Original Gcc1 output layout is [k | f1 f2 f3 f4]; move k to the last lane so the
    # kernel's gate split is an aligned 64-lane slice. Mathematically identical.
    w3 = jnp.concatenate([params["w3"][:, 1:], params["w3"][:, :1]], axis=1)
    b3 = jnp.concatenate([params["b3"][:, 1:], params["b3"][:, :1]], axis=1)
    # Row-split W1 to match the three separate (src_nf, dst_nf, edge_ef) inputs.
    w1 = params["w1"]
    w1s, w1d, w1e = w1[:n_in_fc], w1[n_in_fc:2 * n_in_fc], w1[2 * n_in_fc:]
    f32 = jnp.float32
    return dict(
        w1s=w1s.astype(cdt), w1d=w1d.astype(cdt), w1e=w1e.astype(cdt),
        b1=params["b1"].astype(f32),
        w2=params["w2"].astype(cdt), b2=params["b2"].astype(f32),
        w3=w3.astype(cdt),           b3=b3.astype(f32),
        w4=params["w4"].astype(cdt), b4=params["b4"].astype(f32),
        w5=params["w5"].astype(cdt), b5=params["b5"].astype(f32),
    )


def _vmem_limit_bytes(te, din_parts, n_out, in_itemsize, weight_bytes):
    # Per-step footprint: double-buffered input/output blocks + f32/cdt intermediates
    # + resident weights + headroom.  Clamp <= 48 MiB (safe under v7x's 64 MiB physical
    # VMEM; v5e/v6e have 128 MiB so the same value is comfortably below physical there).
    in_blk = 2 * te * sum(din_parts) * in_itemsize
    out_blk = 2 * te * n_out * 4
    inter = te * (128 + 96 + 65 + 64 + 32) * 4 * 2
    need = in_blk + out_blk + inter + 2 * weight_bytes + (4 << 20)
    return int(min(max(need, 16 << 20), 48 << 20))


# ----------------------------------------------------------------------------
# Forward wrapper (glue): src/dst gather, edge-axis padding, pallas_call.
# ----------------------------------------------------------------------------
def toedge_forward(prepped, src, dst, in_vc, in_ve, *,
                   tile_e=2048, out_dtype=jnp.float32):
    """ToEdge.forward(g, in_vc, in_ve) -> out_ve of shape [E, n_out_fe]."""
    E = in_ve.shape[0]
    n_in_fc = prepped["w1s"].shape[0]
    n_in_fe = prepped["w1e"].shape[0]
    n_out = prepped["w5"].shape[1]

    # --- glue: the DGL apply_edges src/dst gathers (plain XLA gathers; the kernel sees
    #     three separate inputs so no concatenated [E, din] array is materialized).
    # TODO(synk): if the 'gc' node table in_vc is small enough to stay VMEM-resident, the
    # gather itself could move in-kernel via scalar-prefetched src/dst indices.
    src_nf = jnp.take(in_vc, src, axis=0)
    dst_nf = jnp.take(in_vc, dst, axis=0)

    # --- edge tile size: as large as practical (per-step overhead ~0.35 us), but keep
    #     >= 4 tiles when E allows so v7x's 2 TCs both get work on the "parallel" axis.
    e8 = int(8 * pl.cdiv(E, 8))
    te = int(min(tile_e, e8))
    if e8 >= 32 and e8 // te < 4:
        te = int(max(8, 8 * (pl.cdiv(e8, 4) // 8)))
    e_pad = int(te * pl.cdiv(E, te))

    pad = ((0, e_pad - E), (0, 0))
    src_nf = jnp.pad(src_nf, pad)
    dst_nf = jnp.pad(dst_nf, pad)
    edge_ef = jnp.pad(in_ve, pad)

    # Constant index_map -> weights/biases are VMEM-resident across all grid steps.
    resident = lambda a: pl.BlockSpec(a.shape, lambda i: (0, 0))
    row_block = lambda ncols: pl.BlockSpec((te, ncols), lambda i: (i, 0))

    din = 2 * n_in_fc + n_in_fe
    weight_bytes = int(sum(v.size * v.dtype.itemsize for v in prepped.values()))
    act_bytes = e_pad * (din * src_nf.dtype.itemsize + n_out * jnp.dtype(out_dtype).itemsize)
    cost = pl.CostEstimate(
        flops=2 * e_pad * (din * 128 + 128 * 96 + 96 * 65 + 64 * 32 + 32 * n_out),
        transcendentals=e_pad,                                  # one sigmoid column
        bytes_accessed=act_bytes + weight_bytes)

    out = pl.pallas_call(
        toedge_kernel,
        out_shape=jax.ShapeDtypeStruct((e_pad, n_out), out_dtype),
        grid=(e_pad // te,),
        in_specs=[row_block(n_in_fc), row_block(n_in_fc), row_block(n_in_fe),
                  resident(prepped["w1s"]), resident(prepped["w1d"]),
                  resident(prepped["w1e"]), resident(prepped["b1"]),
                  resident(prepped["w2"]), resident(prepped["b2"]),
                  resident(prepped["w3"]), resident(prepped["b3"]),
                  resident(prepped["w4"]), resident(prepped["b4"]),
                  resident(prepped["w5"]), resident(prepped["b5"])],
        out_specs=pl.BlockSpec((te, n_out), lambda i: (i, 0)),   # unpadded, n_out == full dim
        compiler_params=pltpu.CompilerParams(
            dimension_semantics=("parallel",),                   # edge tiles independent
            vmem_limit_bytes=_vmem_limit_bytes(
                te, (n_in_fc, n_in_fc, n_in_fe), n_out,
                src_nf.dtype.itemsize, weight_bytes)),
        cost_estimate=cost,
    )(src_nf, dst_nf, edge_ef,
      prepped["w1s"], prepped["w1d"], prepped["w1e"], prepped["b1"],
      prepped["w2"], prepped["b2"], prepped["w3"], prepped["b3"],
      prepped["w4"], prepped["b4"], prepped["w5"], prepped["b5"])

    return out[:E]


# ----------------------------------------------------------------------------
# Deterministic parameter init (shapes follow ToEdge.__init__)
# ----------------------------------------------------------------------------
def init_params(key, n_in_fc, n_in_fe, n_out_fe):
    din = 2 * n_in_fc + n_in_fe
    ks = jax.random.split(key, 10)

    def lin(kw, kb, fan_in, fan_out):
        w = jax.random.normal(kw, (fan_in, fan_out), jnp.float32) / jnp.sqrt(float(fan_in))
        b = 0.1 * jax.random.normal(kb, (1, fan_out), jnp.float32)
        return w, b

    # mlp_msg_Gcc1 = MLP(din, 128, 96, 16*4 + 1)
    w1, b1 = lin(ks[0], ks[1], din, 128)
    w2, b2 = lin(ks[2], ks[3], 128, 96)
    w3, b3 = lin(ks[4], ks[5], 96, 16 * 4 + 1)     # output columns: [k, f1, f2, f3, f4]
    # mlp_msg_Gcc2 = MLP(16*4, 16*2, n_out_fe)
    w4, b4 = lin(ks[6], ks[7], 16 * 4, 16 * 2)
    w5, b5 = lin(ks[8], ks[9], 16 * 2, n_out_fe)
    return dict(w1=w1, b1=b1, w2=w2, b2=b2, w3=w3, b3=b3, w4=w4, b4=b4, w5=w5, b5=b5)


# ----------------------------------------------------------------------------
# Pure-JAX reference (follows the PyTorch forward exactly, original ordering)
# ----------------------------------------------------------------------------
def toedge_reference(params, src, dst, in_vc, in_ve):
    leaky = lambda x: jnp.where(x > 0, x, 0.2 * x)
    xe = jnp.concatenate([in_vc[src], in_vc[dst], in_ve], axis=1)
    h = leaky(xe @ params["w1"] + params["b1"])
    h = leaky(h @ params["w2"] + params["b2"])
    y = h @ params["w3"] + params["b3"]
    k = jax.nn.sigmoid(y[:, :1])
    f1, f2, f3, f4 = (y[:, 1 + 16 * i: 1 + 16 * (i + 1)] for i in range(4))
    g = jnp.concatenate([f1 * k, f2 * k, f3 * k, f4 * k], axis=1)
    h = leaky(g @ params["w4"] + params["b4"])
    return h @ params["w5"] + params["b5"]


if __name__ == "__main__":
    n_in_fc, n_in_fe, n_out_fe = 8, 16, 16     # small feature dims
    N, E = 16, 40                              # nodes of type 'gc', edges of type 'e_cc'

    key = jax.random.PRNGKey(0)
    kp, kvc, kve, ksrc, kdst = jax.random.split(key, 5)
    params = init_params(kp, n_in_fc, n_in_fe, n_out_fe)

    in_vc = jax.random.normal(kvc, (N, n_in_fc), jnp.float32)
    in_ve = jax.random.normal(kve, (E, n_in_fe), jnp.float32)
    src = jax.random.randint(ksrc, (E,), 0, N, dtype=jnp.int32)
    dst = jax.random.randint(kdst, (E,), 0, N, dtype=jnp.int32)

    ref = toedge_reference(params, src, dst, in_vc, in_ve)

    # f32 operand path (accuracy check).  E=40 -> te=8, 5 grid steps: exercises the
    # multi-tile grid, row padding, and the >=4-tiles-for-megacore logic.
    pf32 = prepare_params(params, n_in_fc, compute_dtype=jnp.float32)
    out_f32 = toedge_forward(pf32, src, dst, in_vc, in_ve)
    jax.block_until_ready(out_f32)
    assert out_f32.shape == (E, n_out_fe)
    assert jnp.allclose(out_f32, ref, rtol=5e-3, atol=5e-3), "f32 kernel mismatch"

    # bf16 operand path: default for production on v5e/v6e/v7x (bf16 MXU operands,
    # f32 accumulation + f32 elementwise epilogue; in-kernel activation cast).
    pbf16 = prepare_params(params, n_in_fc, compute_dtype=jnp.bfloat16)
    out_bf16 = toedge_forward(pbf16, src, dst, in_vc, in_ve)
    jax.block_until_ready(out_bf16)
    assert out_bf16.shape == (E, n_out_fe)
    assert jnp.allclose(out_bf16, ref, rtol=1e-1, atol=1e-1), "bf16 kernel mismatch"

    print("KERNEL_OK")
</pallas_src>

<mosaic_0001>
module attributes {stable_mosaic.version = 11 : i64} {
  func.func @toedge_kernel(%arg0: i32, %arg1: memref<8x8xf32, #tpu.memory_space<vmem>>, %arg2: memref<8x8xf32, #tpu.memory_space<vmem>>, %arg3: memref<8x16xf32, #tpu.memory_space<vmem>>, %arg4: memref<8x128xf32, #tpu.memory_space<vmem>>, %arg5: memref<8x128xf32, #tpu.memory_space<vmem>>, %arg6: memref<16x128xf32, #tpu.memory_space<vmem>>, %arg7: memref<1x128xf32, #tpu.memory_space<vmem>>, %arg8: memref<128x96xf32, #tpu.memory_space<vmem>>, %arg9: memref<1x96xf32, #tpu.memory_space<vmem>>, %arg10: memref<96x65xf32, #tpu.memory_space<vmem>>, %arg11: memref<1x65xf32, #tpu.memory_space<vmem>>, %arg12: memref<64x32xf32, #tpu.memory_space<vmem>>, %arg13: memref<1x32xf32, #tpu.memory_space<vmem>>, %arg14: memref<32x16xf32, #tpu.memory_space<vmem>>, %arg15: memref<1x16xf32, #tpu.memory_space<vmem>>, %arg16: memref<8x16xf32, #tpu.memory_space<vmem>>) attributes {dimension_semantics = [#tpu.dimension_semantics<parallel>], iteration_bounds = array<i64: 5>, scalar_prefetch = 0 : i64, scratch_operands = 0 : i64, tpu.core_type = #tpu.core_type<tc>, window_params = [{transform_indices = @transform_0, window_bounds = array<i64: 8, 8>}, {transform_indices = @transform_1, window_bounds = array<i64: 8, 8>}, {transform_indices = @transform_2, window_bounds = array<i64: 8, 16>}, {pipeline_mode = #tpu.pipeline_mode<synchronous>, transform_indices = @transform_3, window_bounds = array<i64: 8, 128>}, {pipeline_mode = #tpu.pipeline_mode<synchronous>, transform_indices = @transform_4, window_bounds = array<i64: 8, 128>}, {pipeline_mode = #tpu.pipeline_mode<synchronous>, transform_indices = @transform_5, window_bounds = array<i64: 16, 128>}, {pipeline_mode = #tpu.pipeline_mode<synchronous>, transform_indices = @transform_6, window_bounds = array<i64: 1, 128>}, {pipeline_mode = #tpu.pipeline_mode<synchronous>, transform_indices = @transform_7, window_bounds = array<i64: 128, 96>}, {pipeline_mode = #tpu.pipeline_mode<synchronous>, transform_indices = @transform_8, window_bounds = array<i64: 1, 96>}, {pipeline_mode = #tpu.pipeline_mode<synchronous>, transform_indices = @transform_9, window_bounds = array<i64: 96, 65>}, {pipeline_mode = #tpu.pipeline_mode<synchronous>, transform_indices = @transform_10, window_bounds = array<i64: 1, 65>}, {pipeline_mode = #tpu.pipeline_mode<synchronous>, transform_indices = @transform_11, window_bounds = array<i64: 64, 32>}, {pipeline_mode = #tpu.pipeline_mode<synchronous>, transform_indices = @transform_12, window_bounds = array<i64: 1, 32>}, {pipeline_mode = #tpu.pipeline_mode<synchronous>, transform_indices = @transform_13, window_bounds = array<i64: 32, 16>}, {pipeline_mode = #tpu.pipeline_mode<synchronous>, transform_indices = @transform_14, window_bounds = array<i64: 1, 16>}, {transform_indices = @transform_15, window_bounds = array<i64: 8, 16>}]} {
    %c0 = arith.constant 0 : index
    %c0_0 = arith.constant 0 : index
    %0 = vector.load %arg1[%c0, %c0_0] : memref<8x8xf32, #tpu.memory_space<vmem>>, vector<8x8xf32>
    %c0_1 = arith.constant 0 : index
    %c0_2 = arith.constant 0 : index
    %1 = vector.load %arg2[%c0_1, %c0_2] : memref<8x8xf32, #tpu.memory_space<vmem>>, vector<8x8xf32>
    %c0_3 = arith.constant 0 : index
    %c0_4 = arith.constant 0 : index
    %2 = vector.load %arg3[%c0_3, %c0_4] : memref<8x16xf32, #tpu.memory_space<vmem>>, vector<8x16xf32>
    %c0_5 = arith.constant 0 : index
    %c0_6 = arith.constant 0 : index
    %3 = vector.load %arg4[%c0_5, %c0_6] : memref<8x128xf32, #tpu.memory_space<vmem>>, vector<8x128xf32>
    %cst = arith.constant dense<0.000000e+00> : vector<8x128xf32>
    %4 = tpu.matmul %0, %3, %cst {dimension_numbers = #tpu.dot_dimension_numbers<[1], [0], [0], [1], [0, 0, 1, 1], [], []>} : vector<8x8xf32>, vector<8x128xf32>, vector<8x128xf32> -> vector<8x128xf32>
    %c0_7 = arith.constant 0 : index
    %c0_8 = arith.constant 0 : index
    %5 = vector.load %arg5[%c0_7, %c0_8] : memref<8x128xf32, #tpu.memory_space<vmem>>, vector<8x128xf32>
    %cst_9 = arith.constant dense<0.000000e+00> : vector<8x128xf32>
    %6 = tpu.matmul %1, %5, %cst_9 {dimension_numbers = #tpu.dot_dimension_numbers<[1], [0], [0], [1], [0, 0, 1, 1], [], []>} : vector<8x8xf32>, vector<8x128xf32>, vector<8x128xf32> -> vector<8x128xf32>
    %7 = arith.addf %4, %6 : vector<8x128xf32>
    %c0_10 = arith.constant 0 : index
    %c0_11 = arith.constant 0 : index
    %8 = vector.load %arg6[%c0_10, %c0_11] : memref<16x128xf32, #tpu.memory_space<vmem>>, vector<16x128xf32>
    %cst_12 = arith.constant dense<0.000000e+00> : vector<8x128xf32>
    %9 = tpu.matmul %2, %8, %cst_12 {dimension_numbers = #tpu.dot_dimension_numbers<[1], [0], [0], [1], [0, 0, 1, 1], [], []>} : vector<8x16xf32>, vector<16x128xf32>, vector<8x128xf32> -> vector<8x128xf32>
    %10 = arith.addf %7, %9 : vector<8x128xf32>
    %c0_13 = arith.constant 0 : index
    %c0_14 = arith.constant 0 : index
    %11 = vector.load %arg7[%c0_13, %c0_14] : memref<1x128xf32, #tpu.memory_space<vmem>>, vector<1x128xf32>
    %12 = vector.broadcast %11 : vector<1x128xf32> to vector<8x128xf32>
    %13 = arith.addf %10, %12 : vector<8x128xf32>
    %cst_15 = arith.constant 2.000000e-01 : f32
    %14 = vector.broadcast %cst_15 : f32 to vector<8x128xf32>
    %15 = arith.mulf %14, %13 : vector<8x128xf32>
    %16 = arith.maximumf %13, %15 : vector<8x128xf32>
    %c0_16 = arith.constant 0 : index
    %c0_17 = arith.constant 0 : index
    %17 = vector.load %arg8[%c0_16, %c0_17] : memref<128x96xf32, #tpu.memory_space<vmem>>, vector<128x96xf32>
    %cst_18 = arith.constant dense<0.000000e+00> : vector<8x96xf32>
    %18 = tpu.matmul %16, %17, %cst_18 {dimension_numbers = #tpu.dot_dimension_numbers<[1], [0], [0], [1], [0, 0, 1, 1], [], []>} : vector<8x128xf32>, vector<128x96xf32>, vector<8x96xf32> -> vector<8x96xf32>
    %c0_19 = arith.constant 0 : index
    %c0_20 = arith.constant 0 : index
    %19 = vector.load %arg9[%c0_19, %c0_20] : memref<1x96xf32, #tpu.memory_space<vmem>>, vector<1x96xf32>
    %20 = vector.broadcast %19 : vector<1x96xf32> to vector<8x96xf32>
    %21 = arith.addf %18, %20 : vector<8x96xf32>
    %cst_21 = arith.constant 2.000000e-01 : f32
    %22 = vector.broadcast %cst_21 : f32 to vector<8x96xf32>
    %23 = arith.mulf %22, %21 : vector<8x96xf32>
    %24 = arith.maximumf %21, %23 : vector<8x96xf32>
    %c0_22 = arith.constant 0 : index
    %c0_23 = arith.constant 0 : index
    %25 = vector.load %arg10[%c0_22, %c0_23] : memref<96x65xf32, #tpu.memory_space<vmem>>, vector<96x65xf32>
    %cst_24 = arith.constant dense<0.000000e+00> : vector<8x65xf32>
    %26 = tpu.matmul %24, %25, %cst_24 {dimension_numbers = #tpu.dot_dimension_numbers<[1], [0], [0], [1], [0, 0, 1, 1], [], []>} : vector<8x96xf32>, vector<96x65xf32>, vector<8x65xf32> -> vector<8x65xf32>
    %c0_25 = arith.constant 0 : index
    %c0_26 = arith.constant 0 : index
    %27 = vector.load %arg11[%c0_25, %c0_26] : memref<1x65xf32, #tpu.memory_space<vmem>>, vector<1x65xf32>
    %28 = vector.broadcast %27 : vector<1x65xf32> to vector<8x65xf32>
    %29 = arith.addf %26, %28 : vector<8x65xf32>
    %30 = vector.extract_strided_slice %29 {offsets = [0, 0], sizes = [8, 64], strides = [1, 1]} : vector<8x65xf32> to vector<8x64xf32>
    %31 = vector.extract_strided_slice %29 {offsets = [0, 64], sizes = [8, 1], strides = [1, 1]} : vector<8x65xf32> to vector<8x1xf32>
    %32 = arith.negf %31 : vector<8x1xf32>
    %33 = math.exp %32 : vector<8x1xf32>
    %cst_27 = arith.constant 1.000000e+00 : f32
    %34 = vector.broadcast %cst_27 : f32 to vector<8x1xf32>
    %35 = arith.addf %34, %33 : vector<8x1xf32>
    %36 = arith.divf %34, %35 : vector<8x1xf32>
    %37 = vector.broadcast %36 : vector<8x1xf32> to vector<8x64xf32>
    %38 = arith.mulf %30, %37 : vector<8x64xf32>
    %c0_28 = arith.constant 0 : index
    %c0_29 = arith.constant 0 : index
    %39 = vector.load %arg12[%c0_28, %c0_29] : memref<64x32xf32, #tpu.memory_space<vmem>>, vector<64x32xf32>
    %cst_30 = arith.constant dense<0.000000e+00> : vector<8x32xf32>
    %40 = tpu.matmul %38, %39, %cst_30 {dimension_numbers = #tpu.dot_dimension_numbers<[1], [0], [0], [1], [0, 0, 1, 1], [], []>} : vector<8x64xf32>, vector<64x32xf32>, vector<8x32xf32> -> vector<8x32xf32>
    %c0_31 = arith.constant 0 : index
    %c0_32 = arith.constant 0 : index
    %41 = vector.load %arg13[%c0_31, %c0_32] : memref<1x32xf32, #tpu.memory_space<vmem>>, vector<1x32xf32>
    %42 = vector.broadcast %41 : vector<1x32xf32> to vector<8x32xf32>
    %43 = arith.addf %40, %42 : vector<8x32xf32>
    %cst_33 = arith.constant 2.000000e-01 : f32
    %44 = vector.broadcast %cst_33 : f32 to vector<8x32xf32>
    %45 = arith.mulf %44, %43 : vector<8x32xf32>
    %46 = arith.maximumf %43, %45 : vector<8x32xf32>
    %c0_34 = arith.constant 0 : index
    %c0_35 = arith.constant 0 : index
    %47 = vector.load %arg14[%c0_34, %c0_35] : memref<32x16xf32, #tpu.memory_space<vmem>>, vector<32x16xf32>
    %cst_36 = arith.constant dense<0.000000e+00> : vector<8x16xf32>
    %48 = tpu.matmul %46, %47, %cst_36 {dimension_numbers = #tpu.dot_dimension_numbers<[1], [0], [0], [1], [0, 0, 1, 1], [], []>} : vector<8x32xf32>, vector<32x16xf32>, vector<8x16xf32> -> vector<8x16xf32>
    %c0_37 = arith.constant 0 : index
    %c0_38 = arith.constant 0 : index
    %49 = vector.load %arg15[%c0_37, %c0_38] : memref<1x16xf32, #tpu.memory_space<vmem>>, vector<1x16xf32>
    %50 = vector.broadcast %49 : vector<1x16xf32> to vector<8x16xf32>
    %51 = arith.addf %48, %50 : vector<8x16xf32>
    %c0_39 = arith.constant 0 : index
    %c0_40 = arith.constant 0 : index
    %52 = vector.load %arg16[%c0_39, %c0_40] : memref<8x16xf32, #tpu.memory_space<vmem>>, vector<8x16xf32>
    tpu.vector_store %arg16[%c0_39, %c0_40], %51 {strides = array<i32>} : memref<8x16xf32, #tpu.memory_space<vmem>>, vector<8x16xf32>,
    return
  }
  func.func @transform_0(%arg0: i32) -> (i32, i32) {
    %c0_i32 = arith.constant 0 : i32
    %c0_i32_0 = arith.constant 0 : i32
    return %arg0, %c0_i32 : i32, i32
  }
  func.func @transform_1(%arg0: i32) -> (i32, i32) {
    %c0_i32 = arith.constant 0 : i32
    %c0_i32_0 = arith.constant 0 : i32
    return %arg0, %c0_i32 : i32, i32
  }
  func.func @transform_2(%arg0: i32) -> (i32, i32) {
    %c0_i32 = arith.constant 0 : i32
    %c0_i32_0 = arith.constant 0 : i32
    return %arg0, %c0_i32 : i32, i32
  }
  func.func @transform_3(%arg0: i32) -> (i32, i32) {
    %c0_i32 = arith.constant 0 : i32
    %c0_i32_0 = arith.constant 0 : i32
    %c0_i32_1 = arith.constant 0 : i32
    return %c0_i32, %c0_i32_0 : i32, i32
  }
  func.func @transform_4(%arg0: i32) -> (i32, i32) {
    %c0_i32 = arith.constant 0 : i32
    %c0_i32_0 = arith.constant 0 : i32
    %c0_i32_1 = arith.constant 0 : i32
    return %c0_i32, %c0_i32_0 : i32, i32
  }
  func.func @transform_5(%arg0: i32) -> (i32, i32) {
    %c0_i32 = arith.constant 0 : i32
    %c0_i32_0 = arith.constant 0 : i32
    %c0_i32_1 = arith.constant 0 : i32
    return %c0_i32, %c0_i32_0 : i32, i32
  }
  func.func @transform_6(%arg0: i32) -> (i32, i32) {
    %c0_i32 = arith.constant 0 : i32
    %c0_i32_0 = arith.constant 0 : i32
    %c0_i32_1 = arith.constant 0 : i32
    return %c0_i32, %c0_i32_0 : i32, i32
  }
  func.func @transform_7(%arg0: i32) -> (i32, i32) {
    %c0_i32 = arith.constant 0 : i32
    %c0_i32_0 = arith.constant 0 : i32
    %c0_i32_1 = arith.constant 0 : i32
    return %c0_i32, %c0_i32_0 : i32, i32
  }
  func.func @transform_8(%arg0: i32) -> (i32, i32) {
    %c0_i32 = arith.constant 0 : i32
    %c0_i32_0 = arith.constant 0 : i32
    %c0_i32_1 = arith.constant 0 : i32
    return %c0_i32, %c0_i32_0 : i32, i32
  }
  func.func @transform_9(%arg0: i32) -> (i32, i32) {
    %c0_i32 = arith.constant 0 : i32
    %c0_i32_0 = arith.constant 0 : i32
    %c0_i32_1 = arith.constant 0 : i32
    return %c0_i32, %c0_i32_0 : i32, i32
  }
  func.func @transform_10(%arg0: i32) -> (i32, i32) {
    %c0_i32 = arith.constant 0 : i32
    %c0_i32_0 = arith.constant 0 : i32
    %c0_i32_1 = arith.constant 0 : i32
    return %c0_i32, %c0_i32_0 : i32, i32
  }
  func.func @transform_11(%arg0: i32) -> (i32, i32) {
    %c0_i32 = arith.constant 0 : i32
    %c0_i32_0 = arith.constant 0 : i32
    %c0_i32_1 = arith.constant 0 : i32
    return %c0_i32, %c0_i32_0 : i32, i32
  }
  func.func @transform_12(%arg0: i32) -> (i32, i32) {
    %c0_i32 = arith.constant 0 : i32
    %c0_i32_0 = arith.constant 0 : i32
    %c0_i32_1 = arith.constant 0 : i32
    return %c0_i32, %c0_i32_0 : i32, i32
  }
  func.func @transform_13(%arg0: i32) -> (i32, i32) {
    %c0_i32 = arith.constant 0 : i32
    %c0_i32_0 = arith.constant 0 : i32
    %c0_i32_1 = arith.constant 0 : i32
    return %c0_i32, %c0_i32_0 : i32, i32
  }
  func.func @transform_14(%arg0: i32) -> (i32, i32) {
    %c0_i32 = arith.constant 0 : i32
    %c0_i32_0 = arith.constant 0 : i32
    %c0_i32_1 = arith.constant 0 : i32
    return %c0_i32, %c0_i32_0 : i32, i32
  }
  func.func @transform_15(%arg0: i32) -> (i32, i32) {
    %c0_i32 = arith.constant 0 : i32
    %c0_i32_0 = arith.constant 0 : i32
    return %arg0, %c0_i32 : i32, i32
  }
}

</mosaic_0001>

<bundles_post_ra>
// kernel: tpu_custom_call.1
= control target key start
LH: loop header
LB: loop body
LE: loop exit
PB: predicated region body
PF: predicated region fallthrough
CT: control target
= control target key end

     0   :  { %s1572_s18 = smov 0   ;;  %s1787_s0 = inlined_call_operand.vmem [shape: f32[40,8], index: 0, kind: input, shape index: {}]   ;;  %s1788_s1 = inlined_call_operand.vmem [shape: f32[40,8], index: 1, kind: input, shape index: {}]   ;;  %s1789_s2 = inlined_call_operand.vmem [shape: f32[40,16], index: 2, kind: input, shape index: {}]   ;;  %s1790_s3 = inlined_call_operand.vmem [shape: f32[8,128], index: 3, kind: input, shape index: {}]   ;;  %s1791_s4 = inlined_call_operand.vmem [shape: f32[8,128], index: 4, kind: input, shape index: {}]   ;;  %s1792_s5 = inlined_call_operand.vmem [shape: f32[16,128], index: 5, kind: input, shape index: {}]   ;;  %s1793_s6 = inlined_call_operand.vmem [shape: f32[1,128], index: 6, kind: input, shape index: {}]   ;;  %s1794_s7 = inlined_call_operand.vmem [shape: f32[128,96], index: 7, kind: input, shape index: {}]   ;;  %s1795_s8 = inlined_call_operand.vmem [shape: f32[1,96], index: 8, kind: input, shape index: {}]   ;;  %s1796_s9 = inlined_call_operand.vmem [shape: f32[96,65], index: 9, kind: input, shape index: {}]   ;;  %s1797_s10 = inlined_call_operand.vmem [shape: f32[1,65], index: 10, kind: input, shape index: {}]   ;;  %s1798_s11 = inlined_call_operand.vmem [shape: f32[64,32], index: 11, kind: input, shape index: {}]   ;;  %s1799_s12 = inlined_call_operand.vmem [shape: f32[1,32], index: 12, kind: input, shape index: {}]   ;;  %s1800_s13 = inlined_call_operand.vmem [shape: f32[32,16], index: 13, kind: input, shape index: {}]   ;;  %s1801_s14 = inlined_call_operand.vmem [shape: f32[1,16], index: 14, kind: input, shape index: {}]   ;;  %s1802_s15 = inlined_call_operand.vmem [shape: f32[40,16], index: 15, kind: output, shape index: {}]  }
   0x1 LB: > { %s1217_s19 = sadd.s32 4294967295, %s1486_s18   ;;  %p1221_p0 = scmp.ge.s32.totalorder %s1486_s18, 1  ;;  %s1486_s18 = sphi %s1572_s18, %s25_s18  }
   0x2   : > { %p454_p1 = scmp.lt.s32.totalorder %s1486_s18, 6 }
   0x4   : > { %p455_p2 = pnand %p1221_p0, %p454_p1 }
   0x5   : > { %v528_v0 = vld [vmem:[%s1791_s4] sm:$0xff] (!%p455_p2)  ;;  %p508_p3 = scmp.lt.s32.totalorder (!%p455_p2), %s1217_s19, 4  ;;  %v1488_v2 = vmov (!%p455_p2), 0.0   ;;  %v677_v4 = vld [vmem:[%s1792_s5 + $0x8] sm:$0xff] (!%p455_p2)  ;;  %vm1489_vm0 = vmmov (!%p455_p2), 0   ;;  %v1490_v7 = vmov (!%p455_p2), 0.0|0.0  }
   0x6   : > { %458 = sbr.rel (%p455_p2) target bundleno = 1262 (0x4ee), region = 80  ;;  %v527_v1 = vld [vmem:[%s1790_s3] sm:$0xff] (!%p455_p2)  ;;  %1291 = vmatprep.subr.mxu0 (!%p455_p2), %v1488_v2  ;;  %1296 = vmatprep.subr.mxu1 (!%p455_p2), %v1488_v2  ;;  %v764_v6 = vld [vmem:[%s1794_s7 + $0x8] sm:$0xff] (!%p455_p2)  ;;  %vm529_vm1 = vcmask (!%p455_p2), 64512   ;;  %v765_v10 = vld [vmem:[%s1794_s7 + $0x10] sm:$0xff] (!%p455_p2)  ;;  %vm678_vm2 = vcmask (!%p455_p2), 130048  }
   0x7   : > { %v676_v3 = vld [vmem:[%s1792_s5] sm:$0xff] (!%p455_p2)  ;;  %1292 = vmatpush3.msra.mxu0 (!%p455_p2), %v528_v0  ;;  %1293 = vmatprep.mubr.msk.f32.mxu0 (!%p455_p2), %vm1489_vm0, %v1488_v2  ;;  %v766_v13 = vld [vmem:[%s1794_s7 + $0x18] sm:$0xff] (!%p455_p2)  ;;  %v768_v17 = vld [vmem:[%s1794_s7 + $0x28] sm:$0xff] (!%p455_p2)  ;;  %vm877_vm3 = vcmask (!%p455_p2), 785408   ;;  %vm978_vm4 = vcmask (!%p455_p2), 523264   ;;  %vm1065_vm5 = vcmask (!%p455_p2), 261120  }
   0x8   : > { %v763_v5 = vld [vmem:[%s1794_s7] sm:$0xff] (!%p455_p2)  ;;  %1297 = vmatpush3.msra.mxu1 (!%p455_p2), %v527_v1  ;;  %1298 = vmatprep.mubr.msk.f32.mxu1 (!%p455_p2), %vm1489_vm0, %v1488_v2  ;;  %v1401_v8 = vpack.c.bf16 (!%p455_p2), %v677_v4, %v676_v3  ;;  %v1407_v15 = vpack.c.bf16 (!%p455_p2), %v766_v13, %v765_v10  ;;  %v769_v19 = vld [vmem:[%s1794_s7 + $0x30] sm:$0xff] (!%p455_p2)  ;;  %v770_v20 = vld [vmem:[%s1794_s7 + $0x38] sm:$0xff] (!%p455_p2) }
   0x9   : > { %1400 = vmatprep.subr.bf16.mxu0 (!%p455_p2), %v1490_v7  ;;  %1403 = vmatprep.subr.bf16.mxu1 (!%p455_p2), %v1490_v7  ;;  %v1404_v9 = vpack.c.bf16 (!%p455_p2), %v764_v6, %v763_v5  ;;  %v767_v16 = vld [vmem:[%s1794_s7 + $0x20] sm:$0xff] (!%p455_p2)  ;;  %v1413_v21 = vpack.c.bf16 (!%p455_p2), %v770_v20, %v769_v19  ;;  %v772_v23 = vld [vmem:[%s1794_s7 + $0x48] sm:$0xff] (!%p455_p2)  ;;  %v773_v25 = vld [vmem:[%s1794_s7 + $0x50] sm:$0xff] (!%p455_p2) }
   0xa   : > { %v1410_v18 = vpack.c.bf16 (!%p455_p2), %v768_v17, %v767_v16  ;;  %v771_v22 = vld [vmem:[%s1794_s7 + $0x40] sm:$0xff] (!%p455_p2)  ;;  %v774_v26 = vld [vmem:[%s1794_s7 + $0x58] sm:$0xff] (!%p455_p2)  ;;  %v776_v29 = vld [vmem:[%s1794_s7 + $0x68] sm:$0xff] (!%p455_p2) }
   0xb   : > { %v1416_v24 = vpack.c.bf16 (!%p455_p2), %v772_v23, %v771_v22  ;;  %v1419_v27 = vpack.c.bf16 (!%p455_p2), %v774_v26, %v773_v25  ;;  %v775_v28 = vld [vmem:[%s1794_s7 + $0x60] sm:$0xff] (!%p455_p2)  ;;  %v777_v31 = vld [vmem:[%s1794_s7 + $0x70] sm:$0xff] (!%p455_p2)  ;;  %v778_v32 = vld [vmem:[%s1794_s7 + $0x78] sm:$0xff] (!%p455_p2) }
   0xc   : > { %v1422_v30 = vpack.c.bf16 (!%p455_p2), %v776_v29, %v775_v28  ;;  %v1425_v33 = vpack.c.bf16 (!%p455_p2), %v778_v32, %v777_v31  ;;  %v858_v34 = vld [vmem:[%s1796_s9] sm:$0xff] (!%p455_p2)  ;;  %v859_v35 = vld [vmem:[%s1796_s9 + $0x8] sm:$0xff] (!%p455_p2)  ;;  %v860_v36 = vld [vmem:[%s1796_s9 + $0x10] sm:$0xff] (!%p455_p2) }
   0xd   : > { %s1804_s19 = smov (!%p508_p3, %s1217_s19), 4  ;;  %v1428_v37 = vpack.c.bf16 %v859_v35, %v858_v34  ;;  %v861_v38 = vld [vmem:[%s1796_s9 + $0x18] sm:$0xff]  ;;  %v862_v40 = vld [vmem:[%s1796_s9 + $0x20] sm:$0xff]  ;;  %v863_v41 = vld [vmem:[%s1796_s9 + $0x28] sm:$0xff] }
   0xe   : > { %s1605_s17 = sshll.u32 %s1804_s19, 3  ;;  %v1431_v39 = vpack.c.bf16 %v861_v38, %v860_v36  ;;  %v1434_v42 = vpack.c.bf16 %v863_v41, %v862_v40  ;;  %v864_v43 = vld [vmem:[%s1796_s9 + $0x30] sm:$0xff]  ;;  %v865_v44 = vld [vmem:[%s1796_s9 + $0x38] sm:$0xff]  ;;  %v1229_v52 = vld [vmem:[%s1793_s6] ss:$0 sm:$0xff] }
   0xf   : > { %s515_s22 = scalar_lea.vmem %s1788_s1, %s1605_s17  ;;  %s511_s25 = scalar_lea.vmem %s1787_s0, %s1605_s17  ;;  %v1437_v45 = vpack.c.bf16 %v865_v44, %v864_v43  ;;  %v866_v58 = vld [vmem:[%s1796_s9 + $0x40] sm:$0xff]  ;;  %v867_v59 = vld [vmem:[%s1796_s9 + $0x48] sm:$0xff]  ;;  %v868_v61 = vld [vmem:[%s1796_s9 + $0x50] sm:$0xff] }
  0x10   : > { %v525_v11 = vld [vmem:[%s515_s22] sm:$0xff]  ;;  %s519_s29 = scalar_lea.vmem %s1789_s2, %s1605_s17  ;;  %v1440_v60 = vpack.c.bf16 %v867_v59, %v866_v58  ;;  %v869_v62 = vld [vmem:[%s1796_s9 + $0x58] sm:$0xff]  ;;  %v964_v10 = vld [vmem:[%s1798_s11 + $0x8] sm:$0xff]  ;;  %s523_s26 = scalar_lea.vmem %s1802_s15, %s1605_s17 }
  0x11   : > { %v524_v12 = vld [vmem:[%s511_s25] sm:$0xff]  ;;  %1294 = vmatmul.mubr.msk.f32.vlgmr.msra.gmra.mrb[0].mxu0 %vm529_vm1, %v525_v11  ;;  %v1443_v63 = vpack.c.bf16 %v869_v62, %v868_v61  ;;  %v965_v11 = vld [vmem:[%s1798_s11 + $0x10] sm:$0xff]  ;;  %v966_v13 = vld [vmem:[%s1798_s11 + $0x18] sm:$0xff] }
  0x12   : > { %1299 = vmatmul.mubr.msk.f32.vlgmr.msra.gmra.mrb[0].mxu1 %vm529_vm1, %v524_v12  ;;  %1402 = vmatpush3.bf16.msra.mxu0 %v1401_v8  ;;  %v526_v14 = vld [vmem:[%s519_s29] sm:$0xff]  ;;  %v1491_v8 = vmov 64   ;;  %v969_v17 = vld [vmem:[%s1798_s11 + $0x30] sm:$0xff]  ;;  %v1055_v31 = vld [vmem:[%s1800_s13 + $0x8] sm:$0xff] }
  0x13   : > { %1305 = vmatprep.mubr.msk.f32.mxu0 %vm1489_vm0, %v1488_v2  ;;  %1405 = vmatpush3.bf16.msra.mxu1 %v1404_v9  ;;  %v1230_v0 = vld [vmem:[%s1795_s8] ss:$0 sm:$0xff]  ;;  %v1057_v34 = vld [vmem:[%s1800_s13 + $0x18] sm:$0xff] }
  0x14   : > { %1340 = vmatprep.mubr.msk.f32.mxu1 %vm1489_vm0, %v1488_v2  ;;  %1406 = vmatprep.subr.bf16.mxu1 %v1490_v7  ;;  %v963_v9 = vld [vmem:[%s1798_s11] sm:$0xff] }
  0x15   : > { %1427 = vmatprep.subr.bf16.mxu0 %v1490_v7  ;;  %1306 = vmatmul.mubr.msk.f32.vlgmr.msra.gmra.mrb[2].mxu0 %vm678_vm2, %v526_v14  ;;  %v1446_v12 = vpack.c.bf16 %v964_v10, %v963_v9  ;;  %v967_v14 = vld [vmem:[%s1798_s11 + $0x20] sm:$0xff] }
  0x16   : > { %1367 = vmatprep.mubr.msk.f32.mxu0 %vm1489_vm0, %v1488_v2  ;;  %1429 = vmatpush3.bf16.msra.mxu0 %v1428_v37  ;;  %v1231_v20 = vld [vmem:[%s1797_s10] ss:$0 sm:$0xff] }
  0x17   : > { %1408 = vmatpush3.bf16.msra.mxu1 %v1407_v15  ;;  %1430 = vmatprep.subr.bf16.mxu0 %v1490_v7  ;;  %v968_v15 = vld [vmem:[%s1798_s11 + $0x28] sm:$0xff]  ;;  %v1234_v36 = vld [vmem:[%s1799_s12] ss:$0 sm:$0xff] }
  0x18   : > { %1409 = vmatprep.subr.bf16.mxu1 %v1490_v7  ;;  %1475 = vset.pattern.permute.xlu0 %v1491_v8  ;;  %v1452_v16 = vpack.c.bf16 %v968_v15, %v967_v14  ;;  %v1236_v41 = vld [vmem:[%s1801_s14] ss:$0 sm:$0xff] }
  0x1a   : > { %1432 = vmatpush3.bf16.msra.mxu0 %v1431_v39 }
  0x1b   : > { %1411 = vmatpush3.bf16.msra.mxu1 %v1410_v18  ;;  %1433 = vmatprep.subr.bf16.mxu0 %v1490_v7  ;;  %v970_v18 = vld [vmem:[%s1798_s11 + $0x38] sm:$0xff] }
  0x1c   : > { %1412 = vmatprep.subr.bf16.mxu1 %v1490_v7  ;;  %v1455_v19 = vpack.c.bf16 %v970_v18, %v969_v17 }
  0x1e   : > { %1435 = vmatpush3.bf16.msra.mxu0 %v1434_v42 }
  0x1f   : > { %1414 = vmatpush3.bf16.msra.mxu1 %v1413_v21  ;;  %1436 = vmatprep.subr.bf16.mxu0 %v1490_v7 }
  0x20   : > { %1415 = vmatprep.subr.bf16.mxu1 %v1490_v7 }
  0x22   : > { %1438 = vmatpush3.bf16.msra.mxu0 %v1437_v45 }
  0x23   : > { %1417 = vmatpush3.bf16.msra.mxu1 %v1416_v24  ;;  %1439 = vmatprep.subr.bf16.mxu0 %v1490_v7 }
  0x24   : > { %1418 = vmatprep.subr.bf16.mxu1 %v1490_v7 }
  0x26   : > { %1441 = vmatpush3.bf16.msra.mxu0 %v1440_v60 }
  0x27   : > { %1420 = vmatpush3.bf16.msra.mxu1 %v1419_v27  ;;  %1442 = vmatprep.subr.bf16.mxu0 %v1490_v7 }
  0x28   : > { %1421 = vmatprep.subr.bf16.mxu1 %v1490_v7 }
  0x2a   : > { %1444 = vmatpush3.bf16.msra.mxu0 %v1443_v63 }
  0x2b   : > { %1423 = vmatpush3.bf16.msra.mxu1 %v1422_v30  ;;  %1445 = vmatprep.subr.bf16.mxu0 %v1490_v7  ;;  %v1054_v30 = vld [vmem:[%s1800_s13] sm:$0xff] }
  0x2c   : > { %1424 = vmatprep.subr.bf16.mxu1 %v1490_v7  ;;  %v1458_v32 = vpack.c.bf16 %v1055_v31, %v1054_v30 }
  0x2f   : > { %1426 = vmatpush3.bf16.msra.mxu1 %v1425_v33  ;;  %v1056_v33 = vld [vmem:[%s1800_s13 + $0x10] sm:$0xff] }
  0x30   : > { %1457 = vmatprep.subr.bf16.mxu1 %v1490_v7  ;;  %v1461_v35 = vpack.c.bf16 %v1057_v34, %v1056_v33 }
  0xe4   : > { %v599_v46 = vpop.f32.mrb[0].mxu0 }
  0xe5   : > { %v672_v47 = vpop.f32.mrb[0].mxu1  ;;  %v1295_v49 = vpop.f32.mrb[1].mxu0 }
  0xe6   : > { %v673_v48 = vadd.f32 %v672_v47, %v599_v46  ;;  %v1300_v50 = vpop.f32.mrb[1].mxu1 }
  0xe8   : > { %v748_v51 = vpop.f32.mrb[2].mxu0 }
  0xe9   : > { %v752_v53 = vadd.f32 %v748_v51, %v673_v48  ;;  %v1307_v54 = vpop.f32.mrb[3].mxu0 }
  0xeb   : > { %v760_v55 = vadd.f32 %v1229_v52, %v752_v53 }
  0xed   : > { %v761_v56 = vmul.f32 0.2, %v760_v55 }
  0xef   : > { %v762_v57 = vmax.f32 %v760_v55, %v761_v56 }
  0xf1   : > { %1341 = vmatmul.mubr.f32.vlgmr.msra.gmra.mrb[2].mxu1 %v762_v57 }
  0xf2   : > { %1397 = vmatprep.mubr.msk.f32.mxu1 %vm1489_vm0, %v1488_v2  ;;  %1459 = vmatpush3.bf16.msra.mxu1 %v1458_v32 }
  0xf3   : > { %1460 = vmatprep.subr.bf16.mxu1 %v1490_v7 }
  0xf6   : > { %1462 = vmatpush3.bf16.msra.mxu1 %v1461_v35 }
 0x1c4   : > { %v852_v1 = vpop.f32.mrb[2].mxu1 }
 0x1c5   : > { %v853_v3 = vadd.f32 %v1230_v0, %v852_v1  ;;  %v1342_v4 = vpop.f32.mrb[3].mxu1 }
 0x1c7   : > { %v856_v5 = vmul.f32 0.2, %v853_v3 }
 0x1c9   : > { %v857_v6 = vmax.f32 %v853_v3, %v856_v5 }
 0x1cb   : > { %1368 = vmatmul.mubr.msk.f32.vlgmr.msra.gmra.mrb[4].mxu0 %vm877_vm3, %v857_v6 }
 0x1cc   : > { %1386 = vmatprep.mubr.msk.f32.mxu0 %vm1489_vm0, %v1488_v2  ;;  %1447 = vmatpush3.bf16.msra.mxu0 %v1446_v12  ;;  %v1449_v2 = vpack.c.bf16 %v966_v13, %v965_v11 }
 0x1cd   : > { %1448 = vmatprep.subr.bf16.mxu0 %v1490_v7 }
 0x1d0   : > { %1450 = vmatpush3.bf16.msra.mxu0 %v1449_v2 }
 0x1d1   : > { %1451 = vmatprep.subr.bf16.mxu0 %v1490_v7 }
 0x1d4   : > { %1453 = vmatpush3.bf16.msra.mxu0 %v1452_v16 }
 0x1d5   : > { %1454 = vmatprep.subr.bf16.mxu0 %v1490_v7 }
 0x1d8   : > { %1456 = vmatpush3.bf16.msra.mxu0 %v1455_v19 }
 0x29e   : > { %v947_v21 = vpop.f32.mrb[4].mxu0 }
 0x29f   : > { %v948_v22 = vadd.f32 %v1231_v20, %v947_v21  ;;  %v1369_v23 = vpop.f32.mrb[5].mxu0 }
 0x2a1   : > { %v1233_v24 = vmul.f32 -1.442695, %v948_v22 }
 0x2a3   : > { %1476 = vpow2.f32 %v1233_v24 }
 0x2ad   : > { %v1477_v25 = vpop.eup %1476 }
 0x2ae   : > { %v954_v26 = vadd.f32 1.0, %v1477_v25 }
 0x2b0   : > { %1478 = vrcp.f32 %v954_v26 }
 0x2ba   : > { %v1479_v27 = vpop.eup %1478 }
 0x2bb   : > { %959 = vperm.xlu0 %1475, %v1479_v27  }
 0x33a   : > { %v960_v28 = vpop.permute.xlu0 %959 }
 0x33b   : > { %v962_v29 = vmul.f32 %v960_v28, %v948_v22 }
 0x33d   : > { %1387 = vmatmul.mubr.msk.f32.vlgmr.msra.gmra.mrb[6].mxu0 %vm978_vm4, %v962_v29 }
 0x410   : > { %v1048_v37 = vpop.f32.mrb[6].mxu0 }
 0x411   : > { %v1049_v38 = vadd.f32 %v1234_v36, %v1048_v37  ;;  %v1388_v39 = vpop.f32.mrb[7].mxu0 }
 0x413   : > { %v1052_v40 = vmul.f32 0.2, %v1049_v38 }
 0x415   : > { %v1053_v7 = vmax.f32 %v1049_v38, %v1052_v40 }
 0x417   : > { %1398 = vmatmul.mubr.msk.f32.vlgmr.msra.gmra.mrb[4].mxu1 %vm1065_vm5, %v1053_v7 }
 0x4ea   : > { %v1135_v42 = vpop.f32.mrb[4].mxu1 }
 0x4eb   : > { %v1136_v43 = vadd.f32 %v1236_v41, %v1135_v42  ;;  %v1399_v44 = vpop.f32.mrb[5].mxu1 }
 0x4ed   : > { %1139 = vst.msk [vmem:[%s523_s26] sm:$0xff] %vm678_vm2, %v1136_v43 }
 0x4ee PF: > { %s25_s18 = sadd.s32 1, %s1486_s18  }
 0x4ef   : > { %p22_p4 = scmp.ge.s32.totalorder %s25_s18, 7  }
 0x4f1   :  { %24 = sbr.rel (!%p22_p4) target bundleno = 1 (0x1), region = 116 }

</bundles_post_ra>
